<compile_context>
chip_gen: v5e
topology: v5e:2x2
jax: 0.10.0
libtpu: 0.0.40
codegen_flags: <defaults>
</compile_context>

<pallas_src>
import math

import jax
import jax.numpy as jnp
from jax import lax
from jax.experimental import pallas as pl
from jax.experimental.pallas import tpu as pltpu


# ---------------------------------------------------------------------------
# Generation-aware VMEM budgets (v5e/v6e: 128 MiB physical, v7x: 64 MiB)
# ---------------------------------------------------------------------------
def _vmem_capacity_bytes():
    try:
        info = pltpu.get_tpu_info()
        cap = int(getattr(info, "vmem_capacity_bytes", 0))
        if cap > 0:
            return cap
    except Exception:
        pass
    return 64 * 1024 * 1024                      # conservative (v7x-sized) fallback


_VMEM_CAP = _vmem_capacity_bytes()
_VMEM_LIMIT = min(_VMEM_CAP // 2, 64 * 1024 * 1024)   # scoped-vmem limit per call
_BLOCK_BUDGET = _VMEM_CAP // 10                        # single-buffered block bytes/step
                                                       # (double-buffering stays well
                                                       #  under _VMEM_LIMIT)


def _pick_tile(dim, cap=512):
    """Full dim when small (always (8,128)-legal), else a 512 tile."""
    return dim if dim <= cap else cap


# ---------------------------------------------------------------------------
# Kernels
# ---------------------------------------------------------------------------
def _linear_kernel(x_ref, wt_ref, b_ref, o_ref):
    # x: (TM, E_in) cd, wt: (E_in, TN) cd, b: (1, TN) f32  -> o: (TM, TN)
    o_ref[...] = (
        jnp.dot(x_ref[...], wt_ref[...], preferred_element_type=jnp.float32)
        + b_ref[...]
    ).astype(o_ref.dtype)


def _qkv_proj_kernel(x_ref, wq_ref, wk_ref, wv_ref, bq_ref, bk_ref, bv_ref,
                     q_ref, k_ref, v_ref):
    # One x tile drives three MXU matmuls; q/k emitted in compute dtype,
    # v emitted in f32 (preserves returned-value semantics).
    x = x_ref[...]
    q_ref[...] = (jnp.dot(x, wq_ref[...], preferred_element_type=jnp.float32)
                  + bq_ref[...]).astype(q_ref.dtype)
    k_ref[...] = (jnp.dot(x, wk_ref[...], preferred_element_type=jnp.float32)
                  + bk_ref[...]).astype(k_ref.dtype)
    v_ref[...] = (jnp.dot(x, wv_ref[...], preferred_element_type=jnp.float32)
                  + bv_ref[...]).astype(v_ref.dtype)


def _attn_scores_kernel(q_ref, k_ref, o_ref):
    # q: (G, TQ, Dh), k: (G, TK, Dh) -> o: (G, TQ, TK).  K "transpose" folded
    # into the MXU dimension numbers; q is pre-scaled (fold into Wq/bq).
    o_ref[...] = lax.dot_general(
        q_ref[...],
        k_ref[...],
        dimension_numbers=(((2,), (2,)), ((0,), (0,))),
        preferred_element_type=jnp.float32,
    ).astype(o_ref.dtype)


# ---------------------------------------------------------------------------
# Tile selection
# ---------------------------------------------------------------------------
def _proj_tiles(N, E_in, E_out, n_mats, x_bytes, w_bytes, out_bytes_per_elem):
    TM = _pick_tile(N)
    TN = _pick_tile(E_out)

    def step_bytes(tm, tn):
        return (tm * E_in * x_bytes
                + n_mats * E_in * tn * w_bytes
                + n_mats * tn * 4
                + tm * tn * out_bytes_per_elem)

    # Shrink only along 512 -> 256 -> 128 (keeps (8,128) legality); full-dim
    # tiles (dim <= 512) are never shrunk — they already fit easily.
    while step_bytes(TM, TN) > _BLOCK_BUDGET:
        if TN > 128 and TN % 256 == 0 and TN >= TM:
            TN //= 2
        elif TM > 128 and TM % 256 == 0:
            TM //= 2
        elif TN > 128 and TN % 256 == 0:
            TN //= 2
        else:
            break          # still correct; _VMEM_LIMIT has ample headroom
    return TM, TN


def _attn_tiles(BH, Lq, Lk, Dh, qk_bytes):
    TQ = _pick_tile(Lq)
    TK = _pick_tile(Lk)

    def per_head(tq, tk):
        return (tq + tk) * Dh * qk_bytes + tq * tk * 4      # scores are f32

    while per_head(TQ, TK) > _BLOCK_BUDGET:
        if TK > 128 and TK % 256 == 0 and TK >= TQ:
            TK //= 2
        elif TQ > 128 and TQ % 256 == 0:
            TQ //= 2
        elif TK > 128 and TK % 256 == 0:
            TK //= 2
        else:
            break
    G = max(1, min(BH, _BLOCK_BUDGET // max(per_head(TQ, TK), 1)))
    return G, TQ, TK


# ---------------------------------------------------------------------------
# Pallas-backed tiled linear:  y = x2d @ wt + b   (wt already transposed)
# ---------------------------------------------------------------------------
def _linear(x2d, wt, b2, out_dtype):
    N, E_in = x2d.shape
    E_out = wt.shape[1]
    xb = x2d.dtype.itemsize
    wb = wt.dtype.itemsize
    ob = jnp.dtype(out_dtype).itemsize
    TM, TN = _proj_tiles(N, E_in, E_out, 1, xb, wb, ob)
    # columns outer / rows inner: each weight column-tile is fetched once.
    grid = (pl.cdiv(E_out, TN), pl.cdiv(N, TM))
    return pl.pallas_call(
        _linear_kernel,
        out_shape=jax.ShapeDtypeStruct((N, E_out), out_dtype),
        grid=grid,
        in_specs=[
            pl.BlockSpec((TM, E_in), lambda j, i: (i, 0)),
            pl.BlockSpec((E_in, TN), lambda j, i: (0, j)),
            pl.BlockSpec((1, TN), lambda j, i: (0, j)),
        ],
        out_specs=pl.BlockSpec((TM, TN), lambda j, i: (i, j)),
        compiler_params=pltpu.CompilerParams(
            dimension_semantics=("parallel", "parallel"),
            vmem_limit_bytes=_VMEM_LIMIT,
        ),
        cost_estimate=pl.CostEstimate(
            flops=2 * N * E_in * E_out,
            transcendentals=0,
            bytes_accessed=N * E_in * xb + E_in * E_out * wb + N * E_out * ob,
        ),
    )(x2d, wt, b2)


# ---------------------------------------------------------------------------
# Packed self-attention projection: one launch, three outputs (q, k bf16; v f32)
# ---------------------------------------------------------------------------
def _qkv_project(x2d, wq_t, wk_t, wv_t, bq, bk, bv, qk_dtype, v_dtype):
    N, E_in = x2d.shape
    E_out = wq_t.shape[1]
    xb = x2d.dtype.itemsize
    wb = wq_t.dtype.itemsize
    qkb = jnp.dtype(qk_dtype).itemsize
    vb = jnp.dtype(v_dtype).itemsize
    TM, TN = _proj_tiles(N, E_in, E_out, 3, xb, wb, 2 * qkb + vb)
    grid = (pl.cdiv(E_out, TN), pl.cdiv(N, TM))
    w_spec = pl.BlockSpec((E_in, TN), lambda j, i: (0, j))
    b_spec = pl.BlockSpec((1, TN), lambda j, i: (0, j))
    o_spec = pl.BlockSpec((TM, TN), lambda j, i: (i, j))
    return pl.pallas_call(
        _qkv_proj_kernel,
        out_shape=(
            jax.ShapeDtypeStruct((N, E_out), qk_dtype),
            jax.ShapeDtypeStruct((N, E_out), qk_dtype),
            jax.ShapeDtypeStruct((N, E_out), v_dtype),
        ),
        grid=grid,
        in_specs=[
            pl.BlockSpec((TM, E_in), lambda j, i: (i, 0)),
            w_spec, w_spec, w_spec, b_spec, b_spec, b_spec,
        ],
        out_specs=(o_spec, o_spec, o_spec),
        compiler_params=pltpu.CompilerParams(
            dimension_semantics=("parallel", "parallel"),
            vmem_limit_bytes=_VMEM_LIMIT,
        ),
        cost_estimate=pl.CostEstimate(
            flops=6 * N * E_in * E_out,
            transcendentals=0,
            bytes_accessed=(N * E_in * xb + 3 * E_in * E_out * wb
                            + N * E_out * (2 * qkb + vb)),
        ),
    )(x2d, wq_t, wk_t, wv_t, bq, bk, bv)


# ---------------------------------------------------------------------------
# Tiled attention scores:  attn[bh, q, k] = sum_d qh[bh, q, d] * kh[bh, k, d]
# ---------------------------------------------------------------------------
def _attn_scores(qh, kh):
    BH, Lq, Dh = qh.shape
    Lk = kh.shape[1]
    qk_bytes = qh.dtype.itemsize
    G, TQ, TK = _attn_tiles(BH, Lq, Lk, Dh, qk_bytes)
    grid = (pl.cdiv(BH, G), pl.cdiv(Lq, TQ), pl.cdiv(Lk, TK))
    return pl.pallas_call(
        _attn_scores_kernel,
        out_shape=jax.ShapeDtypeStruct((BH, Lq, Lk), jnp.float32),
        grid=grid,
        in_specs=[
            pl.BlockSpec((G, TQ, Dh), lambda g, qi, ki: (g, qi, 0)),
            pl.BlockSpec((G, TK, Dh), lambda g, qi, ki: (g, ki, 0)),
        ],
        out_specs=pl.BlockSpec((G, TQ, TK), lambda g, qi, ki: (g, qi, ki)),
        compiler_params=pltpu.CompilerParams(
            dimension_semantics=("parallel", "parallel", "parallel"),
            vmem_limit_bytes=_VMEM_LIMIT,
        ),
        cost_estimate=pl.CostEstimate(
            flops=2 * BH * Lq * Lk * Dh,
            transcendentals=0,
            bytes_accessed=qk_bytes * BH * (Lq + Lk) * Dh + 4 * BH * Lq * Lk,
        ),
    )(qh, kh)


# ---------------------------------------------------------------------------
# Module equivalent
# ---------------------------------------------------------------------------
class ContentAttentionPallas:
    def __init__(self, embed_dim, num_heads, bias=True, *, key,
                 compute_dtype=jnp.bfloat16):
        assert embed_dim % num_heads == 0, "embed_dim must be divisible by num_heads"
        self.embed_dim = embed_dim
        self.num_heads = num_heads
        self.head_dim = embed_dim // num_heads
        self.compute_dtype = compute_dtype   # bf16 default (full-rate MXU); f32 optional

        E = embed_dim
        # xavier_uniform_ on (3E, E): fan_in = E, fan_out = 3E
        bound = math.sqrt(6.0 / (E + 3 * E))
        self.in_proj_weight = jax.random.uniform(
            key, (3 * E, E), jnp.float32, -bound, bound
        )
        # bias=True -> constant_(0.); bias=False -> adding 0 is identical.
        self.in_proj_bias = jnp.zeros((3 * E,), jnp.float32)

        # Pre-transpose weights once; fold 1/sqrt(Dh) into Wq / bq (fold done
        # in f32, then cast to compute dtype).
        scale = 1.0 / math.sqrt(self.head_dim)
        cd = compute_dtype
        self._wq_t = (self.in_proj_weight[:E].T * scale).astype(cd)
        self._wk_t = self.in_proj_weight[E:2 * E].T.astype(cd)
        self._wv_t = self.in_proj_weight[2 * E:].T.astype(cd)
        self._bq = (self.in_proj_bias[:E] * scale).reshape(1, E).astype(jnp.float32)
        self._bk = self.in_proj_bias[E:2 * E].reshape(1, E).astype(jnp.float32)
        self._bv = self.in_proj_bias[2 * E:].reshape(1, E).astype(jnp.float32)

    def __call__(self, query, key, value):
        E, H, Dh = self.embed_dim, self.num_heads, self.head_dim
        Lq, B, _ = query.shape
        Lk = key.shape[0]
        Lv = value.shape[0]
        cd = self.compute_dtype

        if (query is key) and (key is value):
            # Self-attention fast path: activations read from HBM once, one
            # launch, three outputs emitted directly (q/k in compute dtype,
            # v in f32) — no post-hoc qkv slicing.
            # NOTE: object-identity check; distinct-but-equal arrays fall back
            # to the (equally correct) general path below.
            x2d = query.reshape(Lq * B, E).astype(cd)
            q2d, k2d, v2d = _qkv_project(
                x2d, self._wq_t, self._wk_t, self._wv_t,
                self._bq, self._bk, self._bv,
                qk_dtype=cd, v_dtype=jnp.float32)
        else:
            q2d = _linear(query.reshape(Lq * B, E).astype(cd), self._wq_t,
                          self._bq, cd)
            k2d = _linear(key.reshape(Lk * B, E).astype(cd), self._wk_t,
                          self._bk, cd)
            v2d = _linear(value.reshape(Lv * B, E).astype(cd), self._wv_t,
                          self._bv, jnp.float32)

        # Head-major layout for the score kernel (matches torch view+transpose).
        # TODO(synk): this permute is an XLA transpose (now in compute dtype);
        # folding it into the score kernel needs a middle-dim batched
        # dot_general / in-VMEM sublane relayout Mosaic doesn't lower robustly.
        qh = q2d.reshape(Lq, B * H, Dh).transpose(1, 0, 2)   # (BH, Lq, Dh)
        kh = k2d.reshape(Lk, B * H, Dh).transpose(1, 0, 2)   # (BH, Lk, Dh)

        attn = _attn_scores(qh, kh)                           # (BH, Lq, Lk) f32
        v = v2d.reshape(Lv, B, E)                             # f32
        return attn, v


# ---------------------------------------------------------------------------
# Pure-JAX reference (sanity check for the Pallas path)
# ---------------------------------------------------------------------------
def _reference(module, query, key, value):
    E, H = module.embed_dim, module.num_heads
    Dh = E // H
    W, b = module.in_proj_weight, module.in_proj_bias
    q = query @ W[:E].T + b[:E]
    k = key @ W[E:2 * E].T + b[E:2 * E]
    v = value @ W[2 * E:].T + b[2 * E:]
    Lq, B, _ = q.shape
    Lk = k.shape[0]
    qh = q.reshape(Lq, B * H, Dh).transpose(1, 0, 2) / math.sqrt(Dh)
    kh = k.reshape(Lk, B * H, Dh).transpose(1, 0, 2)
    attn = jnp.einsum("bqd,bkd->bqk", qh, kh)
    return attn, v


if __name__ == "__main__":
    # Small, module-consistent shapes: seq=8, batch=2, embed_dim=32, heads=4
    L, B, E, H = 8, 2, 32, 4

    root = jax.random.PRNGKey(0)
    k_w, k_q, k_k, k_v = jax.random.split(root, 4)

    query = jax.random.normal(k_q, (L, B, E), jnp.float32)
    key = jax.random.normal(k_k, (L, B, E), jnp.float32)
    value = jax.random.normal(k_v, (L, B, E), jnp.float32)

    # --- f32 compute path: tight check of kernel plumbing ---
    mod_f32 = ContentAttentionPallas(E, H, bias=True, key=k_w,
                                     compute_dtype=jnp.float32)
    attn, v = mod_f32(query, key, value)
    jax.block_until_ready((attn, v))
    attn_ref, v_ref = _reference(mod_f32, query, key, value)
    assert attn.shape == (B * H, L, L) and v.shape == (L, B, E)
    assert jnp.allclose(attn, attn_ref, atol=1e-4, rtol=1e-4)
    assert jnp.allclose(v, v_ref, atol=1e-4, rtol=1e-4)

    attn_s, v_s = mod_f32(query, query, query)     # packed self-attn fast path
    jax.block_until_ready((attn_s, v_s))
    attn_s_ref, v_s_ref = _reference(mod_f32, query, query, query)
    assert jnp.allclose(attn_s, attn_s_ref, atol=1e-4, rtol=1e-4)
    assert jnp.allclose(v_s, v_s_ref, atol=1e-4, rtol=1e-4)

    # --- default bf16 compute path (f32 accumulation / f32 outputs) ---
    mod_bf16 = ContentAttentionPallas(E, H, bias=True, key=k_w)
    attn_b, v_b = mod_bf16(query, key, value)
    jax.block_until_ready((attn_b, v_b))
    attn_bref, v_bref = _reference(mod_bf16, query, key, value)
    assert attn_b.dtype == jnp.float32 and v_b.dtype == jnp.float32
    assert jnp.allclose(attn_b, attn_bref, atol=5e-2, rtol=5e-2)
    assert jnp.allclose(v_b, v_bref, atol=5e-2, rtol=5e-2)

    attn_bs, v_bs = mod_bf16(query, query, query)  # packed fast path, bf16
    jax.block_until_ready((attn_bs, v_bs))
    attn_bs_ref, v_bs_ref = _reference(mod_bf16, query, query, query)
    assert jnp.allclose(attn_bs, attn_bs_ref, atol=5e-2, rtol=5e-2)
    assert jnp.allclose(v_bs, v_bs_ref, atol=5e-2, rtol=5e-2)

    print("KERNEL_OK")
</pallas_src>

<mosaic_0001>
module attributes {stable_mosaic.version = 11 : i64} {
  func.func @_linear_kernel(%arg0: i32, %arg1: i32, %arg2: memref<16x32xf32, #tpu.memory_space<vmem>>, %arg3: memref<32x32xf32, #tpu.memory_space<vmem>>, %arg4: memref<1x32xf32, #tpu.memory_space<vmem>>, %arg5: memref<16x32xf32, #tpu.memory_space<vmem>>) attributes {dimension_semantics = [#tpu.dimension_semantics<parallel>, #tpu.dimension_semantics<parallel>], iteration_bounds = array<i64: 1, 1>, scalar_prefetch = 0 : i64, scratch_operands = 0 : i64, tpu.core_type = #tpu.core_type<tc>, window_params = [{transform_indices = @transform_0, window_bounds = array<i64: 16, 32>}, {transform_indices = @transform_1, window_bounds = array<i64: 32, 32>}, {transform_indices = @transform_2, window_bounds = array<i64: 1, 32>}, {transform_indices = @transform_3, window_bounds = array<i64: 16, 32>}]} {
    %c0 = arith.constant 0 : index
    %c0_0 = arith.constant 0 : index
    %0 = vector.load %arg2[%c0, %c0_0] : memref<16x32xf32, #tpu.memory_space<vmem>>, vector<16x32xf32>
    %c0_1 = arith.constant 0 : index
    %c0_2 = arith.constant 0 : index
    %1 = vector.load %arg3[%c0_1, %c0_2] : memref<32x32xf32, #tpu.memory_space<vmem>>, vector<32x32xf32>
    %cst = arith.constant dense<0.000000e+00> : vector<16x32xf32>
    %2 = tpu.matmul %0, %1, %cst {dimension_numbers = #tpu.dot_dimension_numbers<[1], [0], [0], [1], [0, 0, 1, 1], [], []>} : vector<16x32xf32>, vector<32x32xf32>, vector<16x32xf32> -> vector<16x32xf32>
    %c0_3 = arith.constant 0 : index
    %c0_4 = arith.constant 0 : index
    %3 = vector.load %arg4[%c0_3, %c0_4] : memref<1x32xf32, #tpu.memory_space<vmem>>, vector<1x32xf32>
    %4 = vector.broadcast %3 : vector<1x32xf32> to vector<16x32xf32>
    %5 = arith.addf %2, %4 : vector<16x32xf32>
    %c0_5 = arith.constant 0 : index
    %c0_6 = arith.constant 0 : index
    %6 = vector.load %arg5[%c0_5, %c0_6] : memref<16x32xf32, #tpu.memory_space<vmem>>, vector<16x32xf32>
    tpu.vector_store %arg5[%c0_5, %c0_6], %5 {strides = array<i32>} : memref<16x32xf32, #tpu.memory_space<vmem>>, vector<16x32xf32>,
    return
  }
  func.func @transform_0(%arg0: i32, %arg1: i32) -> (i32, i32) {
    %c0_i32 = arith.constant 0 : i32
    %c0_i32_0 = arith.constant 0 : i32
    return %arg1, %c0_i32 : i32, i32
  }
  func.func @transform_1(%arg0: i32, %arg1: i32) -> (i32, i32) {
    %c0_i32 = arith.constant 0 : i32
    %c0_i32_0 = arith.constant 0 : i32
    return %c0_i32, %arg0 : i32, i32
  }
  func.func @transform_2(%arg0: i32, %arg1: i32) -> (i32, i32) {
    %c0_i32 = arith.constant 0 : i32
    %c0_i32_0 = arith.constant 0 : i32
    return %c0_i32, %arg0 : i32, i32
  }
  func.func @transform_3(%arg0: i32, %arg1: i32) -> (i32, i32) {
    %c0_i32 = arith.constant 0 : i32
    return %arg1, %arg0 : i32, i32
  }
}

</mosaic_0001>

<bundles_post_ra>
// kernel: tpu_custom_call.1
= control target key start
LH: loop header
LB: loop body
LE: loop exit
PB: predicated region body
PF: predicated region fallthrough
CT: control target
= control target key end

     0   :  { %8 = vsyncpa [#allocation3], 0  ;;  %s249_s0 = inlined_call_operand.hbm [shape: f32[16,32], index: 0, kind: input, shape index: {}]   ;;  %s250_s1 = inlined_call_operand.hbm [shape: f32[32,32], index: 1, kind: input, shape index: {}]   ;;  %s251_s2 = inlined_call_operand.vmem [shape: f32[1,32], index: 2, kind: input, shape index: {}]   ;;  %s252_s3 = inlined_call_operand.hbm [shape: f32[16,32], index: 3, kind: output, shape index: {}]  }
   0x1   :  { %9 = vsyncpa [#allocation6], 0 }
   0x2   :  { %10 = vsyncpa [#allocation4], 0  ;;  %s15_s14 = sshll.u32 %s249_s0, 4  ;;  %s199_s15 = smov [#allocation2]   ;;  %s16_s14 = int_to_ptr.hbm [resolvable:$true] %s15_s14 }
   0x3   :  { %s17_s16 = sshll.u32 %s199_s15, 4  ;;  %s28_s19 = sshll.u32 %s250_s1, 4  ;;  %s18_s16 = int_to_ptr.vmem [resolvable:$true] %s17_s16  ;;  %s29_s19 = int_to_ptr.hbm [resolvable:$true] %s28_s19 }
   0x4   :  { %s200_s20 = smov 128   ;;  %s201_s21 = smov 8  }
   0x5   :  { %23 = dma.hbm_to_vmem [thread:$0]  %s16_s14, 256, %s18_s16, [#allocation3], %s200_s20, %s200_s20, %s201_s21  }
   0x6   :  { %s202_s22 = smov [#allocation5]  }
   0x7   :  { %s30_s23 = sshll.u32 %s202_s22, 4  ;;  %s31_s23 = int_to_ptr.vmem [resolvable:$true] %s30_s23 }
   0x8   :  { %36 = dma.hbm_to_vmem [thread:$0]  %s29_s19, 512, %s31_s23, [#allocation6], %s200_s20, %s200_s20, %s201_s21  }
   0x9   :  { %193 = dma.done.wait [#allocation3], 256  }
   0xa   :  { %194 = vsyncadd [#allocation3], 4294967040 }
   0xb   :  { %195 = dma.done.wait [#allocation6], 512  }
   0xc   :  { %196 = vsyncadd [#allocation6], 4294966784  ;;  %v52_v0 = vld [vmem:[#allocation5 + $0x18] sm:$0xff]  ;;  %v51_v1 = vld [vmem:[#allocation5 + $0x10] sm:$0xff]  ;;  %vm57_vm0 = vcmask 261120   ;;  %s203_s24 = smov [#allocation7]  }
   0xd   :  { %76 = vmatpush.msra.mxu0 %v52_v0  ;;  %111 = vmatpush.msra.mxu1 %v52_v0  ;;  %v50_v2 = vld [vmem:[#allocation5 + $0x8] sm:$0xff]  ;;  %v49_v3 = vld [vmem:[#allocation5] sm:$0xff]  ;;  %v47_v4 = vld [vmem:[#allocation2] sm:$0xff]  ;;  %s93_s25 = sshll.u32 %s203_s24, 4  ;;  %s95_s28 = sshll.u32 %s252_s3, 4  ;;  %s94_s25 = int_to_ptr.vmem [resolvable:$true] %s93_s25  ;;  %s96_s28 = int_to_ptr.hbm [resolvable:$true] %s95_s28 }
   0xe   :  { %v48_v5 = vld [vmem:[#allocation2 + $0x8] sm:$0xff]  ;;  %v120_v6 = vld [vmem:[%s251_s2] ss:$0 sm:$0xff] }
   0xf   :  { %77 = vmatpush.msra.mxu0 %v51_v1  ;;  %112 = vmatpush.msra.mxu1 %v51_v1 }
  0x11   :  { %78 = vmatpush.msra.mxu0 %v50_v2  ;;  %113 = vmatpush.msra.mxu1 %v50_v2 }
  0x13   :  { %79 = vmatpush.msra.mxu0 %v49_v3  ;;  %114 = vmatpush.msra.mxu1 %v49_v3 }
  0x14   :  { %109 = vmatmul.msk.f32.vlgmr.msra.gmra.mxu0 %vm57_vm0, %v47_v4  ;;  %110 = vmatmul.msk.f32.vlgmr.msra.gmra.mxu1 %vm57_vm0, %v48_v5 }
  0x91   :  { %v81_v7 = vpop.f32.mrf.mxu0  ;;  %v84_v8 = vpop.f32.mrf.mxu1 }
  0x92   :  { %v82_v9 = vadd.f32 %v120_v6, %v81_v7  ;;  %v85_v10 = vadd.f32 %v120_v6, %v84_v8 }
  0x94   :  { %87 = vst.msk [vmem:[#allocation7] sm:$0xff] %vm57_vm0, %v82_v9 }
  0x95   :  { %88 = vst.msk [vmem:[#allocation7 + $0x8] sm:$0xff] %vm57_vm0, %v85_v10 }
  0x96   :  { %101 = dma.vmem_to_hbm [thread:$0]  %s94_s25, 256, %s96_s28, [#allocation4], %s200_s20, %s200_s20, %s201_s21  }
  0x97   :  { %197 = dma.done.wait [#allocation4], 256  }
  0x98   :  { %198 = vsyncadd [#allocation4], 4294967040 }
  0x99   :  { %106 = vsyncpa [#allocation3], 1 }
  0x9a   :  { %107 = vsyncpa [#allocation6], 1 }
  0x9b   :  { %108 = vsyncpa [#allocation4], 1 }

</bundles_post_ra>
